<compile_context>
chip_gen: v6e
topology: v6e:2x2x1
jax: 0.10.0
libtpu: 0.0.40
codegen_flags: <defaults>
</compile_context>

<pallas_src>
import functools

import jax
import jax.numpy as jnp
from jax.experimental import pallas as pl
from jax.experimental.pallas import tpu as pltpu


# ----------------------------------------------------------------------------
# Fused Pallas kernel: encoders -> hstack slab -> ReLU MLP -> fc + sigmoid
# ----------------------------------------------------------------------------
def _comvex_fused_kernel(*refs, n_enc, n_layers, embedding_dim):
    idx = 0
    x_refs = refs[idx:idx + n_enc]; idx += n_enc            # each (B, Fin_e)
    we_refs = refs[idx:idx + n_enc]; idx += n_enc           # each (Fin_e, E)
    be_refs = refs[idx:idx + n_enc]; idx += n_enc           # each (1, E)
    wl_refs = refs[idx:idx + n_layers]; idx += n_layers     # (Fin_l, H)
    bl_refs = refs[idx:idx + n_layers]; idx += n_layers     # (1, H)
    wfc_ref = refs[idx]; idx += 1                           # (1, H)  torch layout
    bfc_ref = refs[idx]; idx += 1                           # (1, 1)
    enc_ref = refs[idx]; idx += 1                           # out: (B, n_enc*E)
    score_ref = refs[idx]; idx += 1                         # out: (B, 1)

    # --- encoders: write each projection into its lane slice of the hstack slab.
    for e in range(n_enc):
        y = jnp.dot(x_refs[e][...], we_refs[e][...],
                    preferred_element_type=jnp.float32)
        y = y + be_refs[e][...]
        enc_ref[:, pl.ds(e * embedding_dim, embedding_dim)] = y.astype(enc_ref.dtype)

    # --- features = Sequential(Linear, ReLU, Dropout)*n_layers (dropout=identity)
    h = enc_ref[...].astype(jnp.float32)                    # lane-dense (B, n_enc*E)
    for l in range(n_layers):
        h = jnp.dot(h, wl_refs[l][...], preferred_element_type=jnp.float32)
        h = jnp.maximum(h + bl_refs[l][...], 0.0)

    # --- fc head (Fout == 1): VPU mul + XLU lane-reduce instead of N=1 MXU matmul.
    logit = jnp.sum(h * wfc_ref[...], axis=-1, keepdims=True) + bfc_ref[...]
    score_ref[...] = jax.nn.sigmoid(logit).astype(score_ref.dtype)


# ----------------------------------------------------------------------------
# Wrapper
# ----------------------------------------------------------------------------
def comvex_linear_forward(xs, params):
    """Returns (encodings, sigmoid(fc(features(hstack(encodings)))).squeeze())."""
    n_enc = len(xs)
    n_layers = len(params["layers_w"])
    E = params["embedding_dim"]
    B = xs[0].shape[0]
    dtype = xs[0].dtype

    inputs = (list(xs)
              + list(params["enc_w"]) + list(params["enc_b"])
              + list(params["layers_w"]) + list(params["layers_b"])
              + [params["fc_w"], params["fc_b"]])

    vmem = pl.BlockSpec(memory_space=pltpu.MemorySpace.VMEM)
    kernel = functools.partial(_comvex_fused_kernel,
                               n_enc=n_enc, n_layers=n_layers, embedding_dim=E)

    enc_slab, score = pl.pallas_call(
        kernel,
        out_shape=(jax.ShapeDtypeStruct((B, n_enc * E), dtype),
                   jax.ShapeDtypeStruct((B, 1), dtype)),
        in_specs=[vmem] * len(inputs),
        out_specs=(vmem, vmem),
    )(*inputs)

    # The slab IS torch.hstack(encodings); slice out the individual encodings
    # in glue (zero extra compute, matches the module's first return value).
    encodings = [enc_slab[:, e * E:(e + 1) * E] for e in range(n_enc)]
    # torch .squeeze() removes all size-1 dims; jnp.squeeze matches that.
    return encodings, jnp.squeeze(score)


# ----------------------------------------------------------------------------
# Deterministic parameter init (PyTorch nn.Linear default: U(-1/sqrt(fan_in), +)).
# Weights are pre-transposed / biases pre-reshaped ONCE here (not per forward).
# ----------------------------------------------------------------------------
def _init_linear(key, fan_in, fan_out):
    kw, kb = jax.random.split(key)
    bound = 1.0 / jnp.sqrt(fan_in)
    w = jax.random.uniform(kw, (fan_out, fan_in), jnp.float32, -bound, bound)
    b = jax.random.uniform(kb, (fan_out,), jnp.float32, -bound, bound)
    return w, b


def build_params(key, in_features, embedding_dim, hidden_size, n_layers):
    n_enc = len(in_features)
    keys = jax.random.split(key, n_enc + n_layers + 1)

    enc_w, enc_b = [], []
    for i, f in enumerate(in_features):
        w, b = _init_linear(keys[i], f, embedding_dim)
        enc_w.append(jnp.transpose(w))          # (Fin, E)
        enc_b.append(b.reshape(1, embedding_dim))

    layers_w, layers_b = [], []
    for i in range(n_layers):
        fan_in = embedding_dim * n_enc if i == 0 else hidden_size
        w, b = _init_linear(keys[n_enc + i], fan_in, hidden_size)
        layers_w.append(jnp.transpose(w))       # (Fin, H)
        layers_b.append(b.reshape(1, hidden_size))

    w_fc, b_fc = _init_linear(keys[-1], hidden_size, 1)
    return {
        "embedding_dim": embedding_dim,
        "enc_w": enc_w, "enc_b": enc_b,
        "layers_w": layers_w, "layers_b": layers_b,
        "fc_w": w_fc,                            # (1, H) torch layout, used on VPU
        "fc_b": b_fc.reshape(1, 1),
    }


# ----------------------------------------------------------------------------
# Pure-JAX reference
# ----------------------------------------------------------------------------
def reference_forward(xs, params):
    encodings = [x @ wt + b for x, wt, b in
                 zip(xs, params["enc_w"], params["enc_b"])]
    h = jnp.concatenate(encodings, axis=1)
    for wt, b in zip(params["layers_w"], params["layers_b"]):
        h = jnp.maximum(h @ wt + b, 0.0)
    logit = jnp.sum(h * params["fc_w"], axis=-1, keepdims=True) + params["fc_b"]
    return encodings, jnp.squeeze(jax.nn.sigmoid(logit))


if __name__ == "__main__":
    # Small shapes consistent with the module's constructor signature.
    batch = 8
    in_features = [128, 256, 384, 128]
    embedding_dim = 32          # 4 encoders * 32 = 128 -> lane-dense hstack slab
    hidden_size = 64
    n_layers = 2

    key = jax.random.PRNGKey(0)
    k_params, *k_inputs = jax.random.split(key, 1 + len(in_features))

    params = build_params(k_params, in_features, embedding_dim, hidden_size, n_layers)
    xs = [jax.random.normal(k, (batch, f), jnp.float32)
          for k, f in zip(k_inputs, in_features)]

    encodings, score = comvex_linear_forward(xs, params)
    encodings = [jax.block_until_ready(e) for e in encodings]
    score = jax.block_until_ready(score)

    # Sanity check against pure-JAX reference.
    ref_encodings, ref_score = reference_forward(xs, params)
    for e, re in zip(encodings, ref_encodings):
        assert jnp.allclose(e, re, atol=1e-4, rtol=1e-4)
    assert score.shape == (batch,)
    assert jnp.allclose(score, ref_score, atol=1e-4, rtol=1e-4)

    print("KERNEL_OK")
</pallas_src>

<mosaic_0001>
module attributes {stable_mosaic.version = 11 : i64} {
  func.func @_comvex_fused_kernel(%arg0: memref<8x128xf32, #tpu.memory_space<vmem>>, %arg1: memref<8x256xf32, #tpu.memory_space<vmem>>, %arg2: memref<8x384xf32, #tpu.memory_space<vmem>>, %arg3: memref<8x128xf32, #tpu.memory_space<vmem>>, %arg4: memref<128x32xf32, #tpu.memory_space<vmem>>, %arg5: memref<256x32xf32, #tpu.memory_space<vmem>>, %arg6: memref<384x32xf32, #tpu.memory_space<vmem>>, %arg7: memref<128x32xf32, #tpu.memory_space<vmem>>, %arg8: memref<1x32xf32, #tpu.memory_space<vmem>>, %arg9: memref<1x32xf32, #tpu.memory_space<vmem>>, %arg10: memref<1x32xf32, #tpu.memory_space<vmem>>, %arg11: memref<1x32xf32, #tpu.memory_space<vmem>>, %arg12: memref<128x64xf32, #tpu.memory_space<vmem>>, %arg13: memref<64x64xf32, #tpu.memory_space<vmem>>, %arg14: memref<1x64xf32, #tpu.memory_space<vmem>>, %arg15: memref<1x64xf32, #tpu.memory_space<vmem>>, %arg16: memref<1x64xf32, #tpu.memory_space<vmem>>, %arg17: memref<1x1xf32, #tpu.memory_space<vmem>>, %arg18: memref<8x128xf32, #tpu.memory_space<vmem>>, %arg19: memref<8x1xf32, #tpu.memory_space<vmem>>) attributes {dimension_semantics = [], scalar_prefetch = 0 : i64, scratch_operands = 0 : i64, tpu.core_type = #tpu.core_type<tc>} {
    %c0 = arith.constant 0 : index
    %c0_0 = arith.constant 0 : index
    %0 = vector.load %arg0[%c0, %c0_0] : memref<8x128xf32, #tpu.memory_space<vmem>>, vector<8x128xf32>
    %c0_1 = arith.constant 0 : index
    %c0_2 = arith.constant 0 : index
    %1 = vector.load %arg4[%c0_1, %c0_2] : memref<128x32xf32, #tpu.memory_space<vmem>>, vector<128x32xf32>
    %cst = arith.constant dense<0.000000e+00> : vector<8x32xf32>
    %2 = tpu.matmul %0, %1, %cst {dimension_numbers = #tpu.dot_dimension_numbers<[1], [0], [0], [1], [0, 0, 1, 1], [], []>} : vector<8x128xf32>, vector<128x32xf32>, vector<8x32xf32> -> vector<8x32xf32>
    %c0_3 = arith.constant 0 : index
    %c0_4 = arith.constant 0 : index
    %3 = vector.load %arg8[%c0_3, %c0_4] : memref<1x32xf32, #tpu.memory_space<vmem>>, vector<1x32xf32>
    %4 = vector.broadcast %3 : vector<1x32xf32> to vector<8x32xf32>
    %5 = arith.addf %2, %4 : vector<8x32xf32>
    %c0_5 = arith.constant 0 : index
    %c0_6 = arith.constant 0 : index
    %6 = vector.load %arg18[%c0_5, %c0_6] : memref<8x128xf32, #tpu.memory_space<vmem>>, vector<8x32xf32>
    tpu.vector_store %arg18[%c0_5, %c0_6], %5 {strides = array<i32>} : memref<8x128xf32, #tpu.memory_space<vmem>>, vector<8x32xf32>,
    %c0_7 = arith.constant 0 : index
    %c0_8 = arith.constant 0 : index
    %7 = vector.load %arg1[%c0_7, %c0_8] : memref<8x256xf32, #tpu.memory_space<vmem>>, vector<8x256xf32>
    %c0_9 = arith.constant 0 : index
    %c0_10 = arith.constant 0 : index
    %8 = vector.load %arg5[%c0_9, %c0_10] : memref<256x32xf32, #tpu.memory_space<vmem>>, vector<256x32xf32>
    %cst_11 = arith.constant dense<0.000000e+00> : vector<8x32xf32>
    %9 = tpu.matmul %7, %8, %cst_11 {dimension_numbers = #tpu.dot_dimension_numbers<[1], [0], [0], [1], [0, 0, 1, 1], [], []>} : vector<8x256xf32>, vector<256x32xf32>, vector<8x32xf32> -> vector<8x32xf32>
    %c0_12 = arith.constant 0 : index
    %c0_13 = arith.constant 0 : index
    %10 = vector.load %arg9[%c0_12, %c0_13] : memref<1x32xf32, #tpu.memory_space<vmem>>, vector<1x32xf32>
    %11 = vector.broadcast %10 : vector<1x32xf32> to vector<8x32xf32>
    %12 = arith.addf %9, %11 : vector<8x32xf32>
    %c0_14 = arith.constant 0 : index
    %c32 = arith.constant 32 : index
    %13 = vector.load %arg18[%c0_14, %c32] : memref<8x128xf32, #tpu.memory_space<vmem>>, vector<8x32xf32>
    tpu.vector_store %arg18[%c0_14, %c32], %12 {strides = array<i32>} : memref<8x128xf32, #tpu.memory_space<vmem>>, vector<8x32xf32>,
    %c0_15 = arith.constant 0 : index
    %c0_16 = arith.constant 0 : index
    %14 = vector.load %arg2[%c0_15, %c0_16] : memref<8x384xf32, #tpu.memory_space<vmem>>, vector<8x384xf32>
    %c0_17 = arith.constant 0 : index
    %c0_18 = arith.constant 0 : index
    %15 = vector.load %arg6[%c0_17, %c0_18] : memref<384x32xf32, #tpu.memory_space<vmem>>, vector<384x32xf32>
    %cst_19 = arith.constant dense<0.000000e+00> : vector<8x32xf32>
    %16 = tpu.matmul %14, %15, %cst_19 {dimension_numbers = #tpu.dot_dimension_numbers<[1], [0], [0], [1], [0, 0, 1, 1], [], []>} : vector<8x384xf32>, vector<384x32xf32>, vector<8x32xf32> -> vector<8x32xf32>
    %c0_20 = arith.constant 0 : index
    %c0_21 = arith.constant 0 : index
    %17 = vector.load %arg10[%c0_20, %c0_21] : memref<1x32xf32, #tpu.memory_space<vmem>>, vector<1x32xf32>
    %18 = vector.broadcast %17 : vector<1x32xf32> to vector<8x32xf32>
    %19 = arith.addf %16, %18 : vector<8x32xf32>
    %c0_22 = arith.constant 0 : index
    %c64 = arith.constant 64 : index
    %20 = vector.load %arg18[%c0_22, %c64] : memref<8x128xf32, #tpu.memory_space<vmem>>, vector<8x32xf32>
    tpu.vector_store %arg18[%c0_22, %c64], %19 {strides = array<i32>} : memref<8x128xf32, #tpu.memory_space<vmem>>, vector<8x32xf32>,
    %c0_23 = arith.constant 0 : index
    %c0_24 = arith.constant 0 : index
    %21 = vector.load %arg3[%c0_23, %c0_24] : memref<8x128xf32, #tpu.memory_space<vmem>>, vector<8x128xf32>
    %c0_25 = arith.constant 0 : index
    %c0_26 = arith.constant 0 : index
    %22 = vector.load %arg7[%c0_25, %c0_26] : memref<128x32xf32, #tpu.memory_space<vmem>>, vector<128x32xf32>
    %cst_27 = arith.constant dense<0.000000e+00> : vector<8x32xf32>
    %23 = tpu.matmul %21, %22, %cst_27 {dimension_numbers = #tpu.dot_dimension_numbers<[1], [0], [0], [1], [0, 0, 1, 1], [], []>} : vector<8x128xf32>, vector<128x32xf32>, vector<8x32xf32> -> vector<8x32xf32>
    %c0_28 = arith.constant 0 : index
    %c0_29 = arith.constant 0 : index
    %24 = vector.load %arg11[%c0_28, %c0_29] : memref<1x32xf32, #tpu.memory_space<vmem>>, vector<1x32xf32>
    %25 = vector.broadcast %24 : vector<1x32xf32> to vector<8x32xf32>
    %26 = arith.addf %23, %25 : vector<8x32xf32>
    %c0_30 = arith.constant 0 : index
    %c96 = arith.constant 96 : index
    %27 = vector.load %arg18[%c0_30, %c96] : memref<8x128xf32, #tpu.memory_space<vmem>>, vector<8x32xf32>
    tpu.vector_store %arg18[%c0_30, %c96], %26 {strides = array<i32>} : memref<8x128xf32, #tpu.memory_space<vmem>>, vector<8x32xf32>,
    %c0_31 = arith.constant 0 : index
    %c0_32 = arith.constant 0 : index
    %28 = vector.load %arg18[%c0_31, %c0_32] : memref<8x128xf32, #tpu.memory_space<vmem>>, vector<8x128xf32>
    %c0_33 = arith.constant 0 : index
    %c0_34 = arith.constant 0 : index
    %29 = vector.load %arg12[%c0_33, %c0_34] : memref<128x64xf32, #tpu.memory_space<vmem>>, vector<128x64xf32>
    %cst_35 = arith.constant dense<0.000000e+00> : vector<8x64xf32>
    %30 = tpu.matmul %28, %29, %cst_35 {dimension_numbers = #tpu.dot_dimension_numbers<[1], [0], [0], [1], [0, 0, 1, 1], [], []>} : vector<8x128xf32>, vector<128x64xf32>, vector<8x64xf32> -> vector<8x64xf32>
    %c0_36 = arith.constant 0 : index
    %c0_37 = arith.constant 0 : index
    %31 = vector.load %arg14[%c0_36, %c0_37] : memref<1x64xf32, #tpu.memory_space<vmem>>, vector<1x64xf32>
    %32 = vector.broadcast %31 : vector<1x64xf32> to vector<8x64xf32>
    %33 = arith.addf %30, %32 : vector<8x64xf32>
    %cst_38 = arith.constant 0.000000e+00 : f32
    %34 = vector.broadcast %cst_38 : f32 to vector<8x64xf32>
    %35 = arith.maximumf %33, %34 : vector<8x64xf32>
    %c0_39 = arith.constant 0 : index
    %c0_40 = arith.constant 0 : index
    %36 = vector.load %arg13[%c0_39, %c0_40] : memref<64x64xf32, #tpu.memory_space<vmem>>, vector<64x64xf32>
    %cst_41 = arith.constant dense<0.000000e+00> : vector<8x64xf32>
    %37 = tpu.matmul %35, %36, %cst_41 {dimension_numbers = #tpu.dot_dimension_numbers<[1], [0], [0], [1], [0, 0, 1, 1], [], []>} : vector<8x64xf32>, vector<64x64xf32>, vector<8x64xf32> -> vector<8x64xf32>
    %c0_42 = arith.constant 0 : index
    %c0_43 = arith.constant 0 : index
    %38 = vector.load %arg15[%c0_42, %c0_43] : memref<1x64xf32, #tpu.memory_space<vmem>>, vector<1x64xf32>
    %39 = vector.broadcast %38 : vector<1x64xf32> to vector<8x64xf32>
    %40 = arith.addf %37, %39 : vector<8x64xf32>
    %cst_44 = arith.constant 0.000000e+00 : f32
    %41 = vector.broadcast %cst_44 : f32 to vector<8x64xf32>
    %42 = arith.maximumf %40, %41 : vector<8x64xf32>
    %c0_45 = arith.constant 0 : index
    %c0_46 = arith.constant 0 : index
    %43 = vector.load %arg16[%c0_45, %c0_46] : memref<1x64xf32, #tpu.memory_space<vmem>>, vector<1x64xf32>
    %44 = vector.broadcast %43 : vector<1x64xf32> to vector<8x64xf32>
    %45 = arith.mulf %42, %44 : vector<8x64xf32>
    %cst_47 = arith.constant dense<0.000000e+00> : vector<8xf32>
    %46 = vector.multi_reduction <add>, %45, %cst_47 [1] : vector<8x64xf32> to vector<8xf32>
    %47 = vector.shape_cast %46 : vector<8xf32> to vector<8x1xf32>
    %c0_48 = arith.constant 0 : index
    %c0_49 = arith.constant 0 : index
    %48 = vector.load %arg17[%c0_48, %c0_49] : memref<1x1xf32, #tpu.memory_space<vmem>>, vector<1x1xf32>
    %49 = vector.broadcast %48 : vector<1x1xf32> to vector<8x1xf32>
    %50 = arith.addf %47, %49 : vector<8x1xf32>
    %51 = arith.negf %50 : vector<8x1xf32>
    %52 = math.exp %51 : vector<8x1xf32>
    %cst_50 = arith.constant 1.000000e+00 : f32
    %53 = vector.broadcast %cst_50 : f32 to vector<8x1xf32>
    %54 = arith.addf %53, %52 : vector<8x1xf32>
    %55 = arith.divf %53, %54 : vector<8x1xf32>
    %c0_51 = arith.constant 0 : index
    %c0_52 = arith.constant 0 : index
    %56 = vector.load %arg19[%c0_51, %c0_52] : memref<8x1xf32, #tpu.memory_space<vmem>>, vector<8x1xf32>
    tpu.vector_store %arg19[%c0_51, %c0_52], %55 {strides = array<i32>} : memref<8x1xf32, #tpu.memory_space<vmem>>, vector<8x1xf32>,
    return
  }
}

</mosaic_0001>

<bundles_post_ra>
// kernel: tpu_custom_call.1
= control target key start
LH: loop header
LB: loop body
LE: loop exit
PB: predicated region body
PF: predicated region fallthrough
CT: control target
= control target key end

     0   :  { %s1806_s0 = inlined_call_operand.vmem [shape: f32[8,128], index: 0, kind: input, shape index: {}]   ;;  %s1807_s1 = inlined_call_operand.vmem [shape: f32[8,256], index: 1, kind: input, shape index: {}]   ;;  %s1808_s2 = inlined_call_operand.vmem [shape: f32[8,384], index: 2, kind: input, shape index: {}]   ;;  %s1809_s3 = inlined_call_operand.vmem [shape: f32[8,128], index: 3, kind: input, shape index: {}]   ;;  %s1810_s4 = inlined_call_operand.vmem [shape: f32[128,32], index: 4, kind: input, shape index: {}]   ;;  %s1811_s5 = inlined_call_operand.vmem [shape: f32[256,32], index: 5, kind: input, shape index: {}]   ;;  %s1812_s6 = inlined_call_operand.vmem [shape: f32[384,32], index: 6, kind: input, shape index: {}]   ;;  %s1813_s7 = inlined_call_operand.vmem [shape: f32[128,32], index: 7, kind: input, shape index: {}]   ;;  %s1814_s8 = inlined_call_operand.vmem [shape: f32[1,32], index: 8, kind: input, shape index: {}]   ;;  %s1815_s9 = inlined_call_operand.vmem [shape: f32[1,32], index: 9, kind: input, shape index: {}]   ;;  %s1816_s10 = inlined_call_operand.vmem [shape: f32[1,32], index: 10, kind: input, shape index: {}]   ;;  %s1817_s11 = inlined_call_operand.vmem [shape: f32[1,32], index: 11, kind: input, shape index: {}]   ;;  %s1818_s12 = inlined_call_operand.vmem [shape: f32[128,64], index: 12, kind: input, shape index: {}]   ;;  %s1819_s13 = inlined_call_operand.vmem [shape: f32[64,64], index: 13, kind: input, shape index: {}]   ;;  %s1820_s14 = inlined_call_operand.vmem [shape: f32[1,64], index: 14, kind: input, shape index: {}]   ;;  %s1821_s15 = inlined_call_operand.vmem [shape: f32[1,64], index: 15, kind: input, shape index: {}]   ;;  %s1822_s16 = inlined_call_operand.vmem [shape: f32[1,64], index: 16, kind: input, shape index: {}]   ;;  %s1823_s17 = inlined_call_operand.<no memory space> [shape: f32[1,1], index: 17, kind: input, shape index: {}]   ;;  %s1824_s18 = inlined_call_operand.hbm [shape: f32[8,128], index: 18, kind: output, shape index: {0}]   ;;  %s1825_s19 = inlined_call_operand.vmem [shape: f32[8,1], index: 19, kind: output, shape index: {1}]  }
   0x1   :  { %1828 = sst [smem:[#allocation6_spill]] %s1806_s0  ;;  %v25_v0 = vstv %s1823_s17 }
   0x2   :  { %1829 = sst [smem:[#allocation7_spill]] %s1807_s1  ;;  %26 = vst [vmem:[#allocation2] sm:$0x1] %v25_v0 }
   0x3   :  { %1830 = sst [smem:[#allocation8_spill]] %s1808_s2 }
   0x4   :  { %1831 = sst [smem:[#allocation9_spill]] %s1809_s3 }
   0x5   :  { %v80_v1 = vld [vmem:[%s1810_s4 + $0x78] sm:$0xff]  ;;  %v1159_v2 = vmov 0.0   ;;  %v79_v3 = vld [vmem:[%s1810_s4 + $0x70] sm:$0xff]  ;;  %vm1160_vm0 = vmmov 0   ;;  %v78_v8 = vld [vmem:[%s1810_s4 + $0x68] sm:$0xff]  ;;  %s1832_s20 = sld [smem:[#allocation6_spill]] }
   0x6   :  { %968 = vmatprep.subr.mxu0 %v1159_v2  ;;  %v193_v4 = vld [vmem:[%s1811_s5 + $0xf8] sm:$0xff]  ;;  %1000 = vmatprep.mubr.msk.f32.mxu0 %vm1160_vm0, %v1159_v2  ;;  %v192_v6 = vld [vmem:[%s1811_s5 + $0xf0] sm:$0xff]  ;;  %v191_v9 = vld [vmem:[%s1811_s5 + $0xe8] sm:$0xff]  ;;  %s1833_s26 = sld [smem:[#allocation7_spill]] }
   0x7   :  { %v177_v5 = vld [vmem:[%s1811_s5 + $0x78] sm:$0xff]  ;;  %969 = vmatpush3.msra.mxu0 %v80_v1  ;;  %838 = vmatprep.subr.mxu1 %v193_v4  ;;  %v176_v7 = vld [vmem:[%s1811_s5 + $0x70] sm:$0xff]  ;;  %v175_v10 = vld [vmem:[%s1811_s5 + $0x68] sm:$0xff] }
   0x8   :  { %970 = vmatprep.subr.mxu0 %v1159_v2  ;;  %839 = vmatpush3.msra.mxu1 %v177_v5  ;;  %v77_v11 = vld [vmem:[%s1810_s4 + $0x60] sm:$0xff]  ;;  %v76_v14 = vld [vmem:[%s1810_s4 + $0x58] sm:$0xff]  ;;  %v75_v17 = vld [vmem:[%s1810_s4 + $0x50] sm:$0xff] }
   0x9   :  { %971 = vmatpush3.msra.mxu0 %v79_v3  ;;  %840 = vmatprep.subr.mxu1 %v192_v6  ;;  %v190_v12 = vld [vmem:[%s1811_s5 + $0xe0] sm:$0xff]  ;;  %v189_v15 = vld [vmem:[%s1811_s5 + $0xd8] sm:$0xff]  ;;  %v188_v18 = vld [vmem:[%s1811_s5 + $0xd0] sm:$0xff] }
   0xa   :  { %972 = vmatprep.subr.mxu0 %v1159_v2  ;;  %841 = vmatpush3.msra.mxu1 %v176_v7  ;;  %v174_v13 = vld [vmem:[%s1811_s5 + $0x60] sm:$0xff]  ;;  %v173_v16 = vld [vmem:[%s1811_s5 + $0x58] sm:$0xff]  ;;  %v172_v19 = vld [vmem:[%s1811_s5 + $0x50] sm:$0xff] }
   0xb   :  { %973 = vmatpush3.msra.mxu0 %v78_v8  ;;  %842 = vmatprep.subr.mxu1 %v191_v9  ;;  %v74_v20 = vld [vmem:[%s1810_s4 + $0x48] sm:$0xff]  ;;  %v73_v23 = vld [vmem:[%s1810_s4 + $0x40] sm:$0xff]  ;;  %v72_v26 = vld [vmem:[%s1810_s4 + $0x38] sm:$0xff] }
   0xc   :  { %974 = vmatprep.subr.mxu0 %v1159_v2  ;;  %843 = vmatpush3.msra.mxu1 %v175_v10  ;;  %v187_v21 = vld [vmem:[%s1811_s5 + $0xc8] sm:$0xff]  ;;  %v186_v24 = vld [vmem:[%s1811_s5 + $0xc0] sm:$0xff]  ;;  %v185_v27 = vld [vmem:[%s1811_s5 + $0xb8] sm:$0xff] }
   0xd   :  { %975 = vmatpush3.msra.mxu0 %v77_v11  ;;  %844 = vmatprep.subr.mxu1 %v190_v12  ;;  %v171_v22 = vld [vmem:[%s1811_s5 + $0x48] sm:$0xff]  ;;  %v170_v25 = vld [vmem:[%s1811_s5 + $0x40] sm:$0xff]  ;;  %v169_v28 = vld [vmem:[%s1811_s5 + $0x38] sm:$0xff] }
   0xe   :  { %976 = vmatprep.subr.mxu0 %v1159_v2  ;;  %845 = vmatpush3.msra.mxu1 %v174_v13  ;;  %v71_v29 = vld [vmem:[%s1810_s4 + $0x30] sm:$0xff]  ;;  %v70_v32 = vld [vmem:[%s1810_s4 + $0x28] sm:$0xff]  ;;  %v69_v35 = vld [vmem:[%s1810_s4 + $0x20] sm:$0xff] }
   0xf   :  { %977 = vmatpush3.msra.mxu0 %v76_v14  ;;  %846 = vmatprep.subr.mxu1 %v189_v15  ;;  %v184_v30 = vld [vmem:[%s1811_s5 + $0xb0] sm:$0xff]  ;;  %v183_v33 = vld [vmem:[%s1811_s5 + $0xa8] sm:$0xff]  ;;  %v182_v36 = vld [vmem:[%s1811_s5 + $0xa0] sm:$0xff] }
  0x10   :  { %978 = vmatprep.subr.mxu0 %v1159_v2  ;;  %847 = vmatpush3.msra.mxu1 %v173_v16  ;;  %v168_v31 = vld [vmem:[%s1811_s5 + $0x30] sm:$0xff]  ;;  %v167_v34 = vld [vmem:[%s1811_s5 + $0x28] sm:$0xff]  ;;  %v166_v37 = vld [vmem:[%s1811_s5 + $0x20] sm:$0xff] }
  0x11   :  { %979 = vmatpush3.msra.mxu0 %v75_v17  ;;  %848 = vmatprep.subr.mxu1 %v188_v18  ;;  %v68_v38 = vld [vmem:[%s1810_s4 + $0x18] sm:$0xff]  ;;  %v67_v41 = vld [vmem:[%s1810_s4 + $0x10] sm:$0xff]  ;;  %v66_v44 = vld [vmem:[%s1810_s4 + $0x8] sm:$0xff] }
  0x12   :  { %980 = vmatprep.subr.mxu0 %v1159_v2  ;;  %849 = vmatpush3.msra.mxu1 %v172_v19  ;;  %v181_v39 = vld [vmem:[%s1811_s5 + $0x98] sm:$0xff]  ;;  %v180_v42 = vld [vmem:[%s1811_s5 + $0x90] sm:$0xff]  ;;  %v179_v45 = vld [vmem:[%s1811_s5 + $0x88] sm:$0xff] }
  0x13   :  { %981 = vmatpush3.msra.mxu0 %v74_v20  ;;  %850 = vmatprep.subr.mxu1 %v187_v21  ;;  %v165_v40 = vld [vmem:[%s1811_s5 + $0x18] sm:$0xff]  ;;  %v164_v43 = vld [vmem:[%s1811_s5 + $0x10] sm:$0xff]  ;;  %v163_v46 = vld [vmem:[%s1811_s5 + $0x8] sm:$0xff] }
  0x14   :  { %982 = vmatprep.subr.mxu0 %v1159_v2  ;;  %851 = vmatpush3.msra.mxu1 %v171_v22  ;;  %v65_v47 = vld [vmem:[%s1810_s4] sm:$0xff]  ;;  %v311_v50 = vld [vmem:[%s1812_s6 + $0xf8] sm:$0xff]  ;;  %v310_v53 = vld [vmem:[%s1812_s6 + $0xf0] sm:$0xff] }
  0x15   :  { %983 = vmatpush3.msra.mxu0 %v73_v23  ;;  %852 = vmatprep.subr.mxu1 %v186_v24  ;;  %v178_v48 = vld [vmem:[%s1811_s5 + $0x80] sm:$0xff]  ;;  %v295_v51 = vld [vmem:[%s1812_s6 + $0x78] sm:$0xff]  ;;  %v161_v54 = vld [vmem:[%s1833_s26 + $0x8] sm:$0xff] }
  0x16   :  { %984 = vmatprep.subr.mxu0 %v1159_v2  ;;  %853 = vmatpush3.msra.mxu1 %v170_v25  ;;  %v64_v49 = vld [vmem:[%s1832_s20] sm:$0xff]  ;;  %v294_v55 = vld [vmem:[%s1812_s6 + $0x70] sm:$0xff]  ;;  %v309_v56 = vld [vmem:[%s1812_s6 + $0xe8] sm:$0xff] }
  0x17   :  { %985 = vmatpush3.msra.mxu0 %v72_v26  ;;  %854 = vmatprep.subr.mxu1 %v185_v27  ;;  %v162_v52 = vld [vmem:[%s1811_s5] sm:$0xff]  ;;  %v293_v58 = vld [vmem:[%s1812_s6 + $0x68] sm:$0xff]  ;;  %v327_v59 = vld [vmem:[%s1812_s6 + $0x178] sm:$0xff] }
  0x18   :  { %986 = vmatprep.subr.mxu0 %v1159_v2  ;;  %855 = vmatpush3.msra.mxu1 %v169_v28  ;;  %v160_v57 = vld [vmem:[%s1833_s26] sm:$0xff]  ;;  %v326_v62 = vld [vmem:[%s1812_s6 + $0x170] sm:$0xff]  ;;  %v307_v63 = vld [vmem:[%s1812_s6 + $0xd8] sm:$0xff] }
  0x19   :  { %987 = vmatpush3.msra.mxu0 %v71_v29  ;;  %856 = vmatprep.subr.mxu1 %v184_v30  ;;  %v308_v60 = vld [vmem:[%s1812_s6 + $0xe0] sm:$0xff]  ;;  %v291_v0 = vld [vmem:[%s1812_s6 + $0x58] sm:$0xff]  ;;  %v325_v1 = vld [vmem:[%s1812_s6 + $0x168] sm:$0xff] }
  0x1a   :  { %988 = vmatprep.subr.mxu0 %v1159_v2  ;;  %857 = vmatpush3.msra.mxu1 %v168_v31  ;;  %v292_v61 = vld [vmem:[%s1812_s6 + $0x60] sm:$0xff]  ;;  %v306_v3 = vld [vmem:[%s1812_s6 + $0xd0] sm:$0xff] }
  0x1b   :  { %989 = vmatpush3.msra.mxu0 %v70_v32  ;;  %858 = vmatprep.subr.mxu1 %v183_v33 }
  0x1c   :  { %990 = vmatprep.subr.mxu0 %v1159_v2  ;;  %859 = vmatpush3.msra.mxu1 %v167_v34 }
  0x1d   :  { %991 = vmatpush3.msra.mxu0 %v69_v35  ;;  %860 = vmatprep.subr.mxu1 %v182_v36 }
  0x1e   :  { %992 = vmatprep.subr.mxu0 %v1159_v2  ;;  %861 = vmatpush3.msra.mxu1 %v166_v37 }
  0x1f   :  { %993 = vmatpush3.msra.mxu0 %v68_v38  ;;  %862 = vmatprep.subr.mxu1 %v181_v39 }
  0x20   :  { %994 = vmatprep.subr.mxu0 %v1159_v2  ;;  %863 = vmatpush3.msra.mxu1 %v165_v40 }
  0x21   :  { %995 = vmatpush3.msra.mxu0 %v67_v41  ;;  %864 = vmatprep.subr.mxu1 %v180_v42 }
  0x22   :  { %996 = vmatprep.subr.mxu0 %v1159_v2  ;;  %865 = vmatpush3.msra.mxu1 %v164_v43 }
  0x23   :  { %997 = vmatpush3.msra.mxu0 %v66_v44  ;;  %866 = vmatprep.subr.mxu1 %v179_v45 }
  0x24   :  { %998 = vmatprep.subr.mxu0 %v1159_v2  ;;  %867 = vmatpush3.msra.mxu1 %v163_v46 }
  0x25   :  { %999 = vmatpush3.msra.mxu0 %v65_v47  ;;  %868 = vmatprep.subr.mxu1 %v178_v48 }
  0x26   :  { %1001 = vmatmul.mubr.f32.vlgmr.msra.gmra.mxu0 %v64_v49  ;;  %873 = vmatprep.subr.mxu0 %v311_v50 }
  0x27   :  { %874 = vmatpush3.msra.mxu0 %v295_v51  ;;  %869 = vmatpush3.msra.mxu1 %v162_v52 }
  0x28   :  { %875 = vmatprep.subr.mxu0 %v310_v53  ;;  %265 = vmatprep.mubr.f32.mxu1 %v161_v54 }
  0x29   :  { %876 = vmatpush3.msra.mxu0 %v294_v55  ;;  %1003 = vmatprep.subr.mxu1 %v1159_v2 }
  0x2a   :  { %877 = vmatprep.subr.mxu0 %v309_v56  ;;  %266 = vmatmul.mubr.f32.vlgmr.msra.gmra.mxu1 %v160_v57 }
  0x2b   :  { %878 = vmatpush3.msra.mxu0 %v293_v58  ;;  %1004 = vmatpush3.msra.mxu1 %v327_v59 }
  0x2c   :  { %879 = vmatprep.subr.mxu0 %v308_v60  ;;  %1005 = vmatprep.subr.mxu1 %v1159_v2 }
  0x2d   :  { %880 = vmatpush3.msra.mxu0 %v292_v61  ;;  %1006 = vmatpush3.msra.mxu1 %v326_v62 }
  0x2e   :  { %27 = vsyncpa [#allocation4], 0  ;;  %881 = vmatprep.subr.mxu0 %v307_v63  ;;  %1007 = vmatprep.subr.mxu1 %v1159_v2  ;;  %v290_v4 = vld [vmem:[%s1812_s6 + $0x50] sm:$0xff]  ;;  %v324_v5 = vld [vmem:[%s1812_s6 + $0x160] sm:$0xff]  ;;  %s1834_s2 = sld [smem:[#allocation8_spill]]  ;;  %vm158_vm1 = vcmask 261120  }
  0x2f   :  { %882 = vmatpush3.msra.mxu0 %v291_v0  ;;  %1008 = vmatpush3.msra.mxu1 %v325_v1  ;;  %v305_v6 = vld [vmem:[%s1812_s6 + $0xc8] sm:$0xff]  ;;  %v323_v8 = vld [vmem:[%s1812_s6 + $0x158] sm:$0xff]  ;;  %v304_v9 = vld [vmem:[%s1812_s6 + $0xc0] sm:$0xff]  ;;  %s1835_s30 = sld [smem:[#allocation9_spill]]  ;;  %s1161_s22 = smov 32   ;;  %vm275_vm2 = vcmask 523520  }
  0x30   :  { %883 = vmatprep.subr.mxu0 %v306_v3  ;;  %1009 = vmatprep.subr.mxu1 %v1159_v2  ;;  %v289_v7 = vld [vmem:[%s1812_s6 + $0x48] sm:$0xff]  ;;  %v288_v10 = vld [vmem:[%s1812_s6 + $0x40] sm:$0xff]  ;;  %v322_v11 = vld [vmem:[%s1812_s6 + $0x150] sm:$0xff]  ;;  %s1162_s20 = smov 64   ;;  %vm479_vm3 = vcmask 785920   ;;  %vm579_vm4 = vcmask 1048320  }
  0x31   :  { %884 = vmatpush3.msra.mxu0 %v290_v4  ;;  %1010 = vmatpush3.msra.mxu1 %v324_v5  ;;  %v303_v12 = vld [vmem:[%s1812_s6 + $0xb8] sm:$0xff]  ;;  %v321_v14 = vld [vmem:[%s1812_s6 + $0x148] sm:$0xff]  ;;  %v302_v15 = vld [vmem:[%s1812_s6 + $0xb0] sm:$0xff]  ;;  %vm691_vm5 = vcmask 523264  }
  0x32   :  { %885 = vmatprep.subr.mxu0 %v305_v6  ;;  %1011 = vmatprep.subr.mxu1 %v1159_v2  ;;  %v287_v13 = vld [vmem:[%s1812_s6 + $0x38] sm:$0xff]  ;;  %v286_v16 = vld [vmem:[%s1812_s6 + $0x30] sm:$0xff]  ;;  %v320_v17 = vld [vmem:[%s1812_s6 + $0x140] sm:$0xff] }
  0x33   :  { %886 = vmatpush3.msra.mxu0 %v289_v7  ;;  %1012 = vmatpush3.msra.mxu1 %v323_v8  ;;  %v301_v18 = vld [vmem:[%s1812_s6 + $0xa8] sm:$0xff]  ;;  %v319_v20 = vld [vmem:[%s1812_s6 + $0x138] sm:$0xff]  ;;  %v300_v21 = vld [vmem:[%s1812_s6 + $0xa0] sm:$0xff] }
  0x34   :  { %887 = vmatprep.subr.mxu0 %v304_v9  ;;  %1013 = vmatprep.subr.mxu1 %v1159_v2  ;;  %v285_v19 = vld [vmem:[%s1812_s6 + $0x28] sm:$0xff]  ;;  %v284_v22 = vld [vmem:[%s1812_s6 + $0x20] sm:$0xff]  ;;  %v318_v23 = vld [vmem:[%s1812_s6 + $0x130] sm:$0xff] }
  0x35   :  { %888 = vmatpush3.msra.mxu0 %v288_v10  ;;  %1014 = vmatpush3.msra.mxu1 %v322_v11  ;;  %v299_v24 = vld [vmem:[%s1812_s6 + $0x98] sm:$0xff]  ;;  %v317_v26 = vld [vmem:[%s1812_s6 + $0x128] sm:$0xff]  ;;  %v298_v27 = vld [vmem:[%s1812_s6 + $0x90] sm:$0xff] }
  0x36   :  { %889 = vmatprep.subr.mxu0 %v303_v12  ;;  %1015 = vmatprep.subr.mxu1 %v1159_v2  ;;  %v283_v25 = vld [vmem:[%s1812_s6 + $0x18] sm:$0xff]  ;;  %v282_v28 = vld [vmem:[%s1812_s6 + $0x10] sm:$0xff]  ;;  %v316_v29 = vld [vmem:[%s1812_s6 + $0x120] sm:$0xff] }
  0x37   :  { %890 = vmatpush3.msra.mxu0 %v287_v13  ;;  %1016 = vmatpush3.msra.mxu1 %v321_v14  ;;  %v297_v30 = vld [vmem:[%s1812_s6 + $0x88] sm:$0xff]  ;;  %v296_v33 = vld [vmem:[%s1812_s6 + $0x80] sm:$0xff]  ;;  %v315_v34 = vld [vmem:[%s1812_s6 + $0x118] sm:$0xff] }
  0x38   :  { %891 = vmatprep.subr.mxu0 %v302_v15  ;;  %1017 = vmatprep.subr.mxu1 %v1159_v2  ;;  %v281_v31 = vld [vmem:[%s1812_s6 + $0x8] sm:$0xff]  ;;  %v280_v35 = vld [vmem:[%s1812_s6] sm:$0xff]  ;;  %v314_v37 = vld [vmem:[%s1812_s6 + $0x110] sm:$0xff] }
  0x39   :  { %892 = vmatpush3.msra.mxu0 %v286_v16  ;;  %1018 = vmatpush3.msra.mxu1 %v320_v17  ;;  %v278_v32 = vld [vmem:[%s1834_s2 + $0x8] sm:$0xff]  ;;  %v277_v36 = vld [vmem:[%s1834_s2] sm:$0xff]  ;;  %v497_v38 = vld [vmem:[%s1813_s7 + $0x78] sm:$0xff] }
  0x3a   :  { %893 = vmatprep.subr.mxu0 %v301_v18  ;;  %1019 = vmatprep.subr.mxu1 %v1159_v2  ;;  %v313_v39 = vld [vmem:[%s1812_s6 + $0x108] sm:$0xff]  ;;  %v496_v40 = vld [vmem:[%s1813_s7 + $0x70] sm:$0xff]  ;;  %v312_v41 = vld [vmem:[%s1812_s6 + $0x100] sm:$0xff] }
  0x3b   :  { %894 = vmatpush3.msra.mxu0 %v285_v19  ;;  %1020 = vmatpush3.msra.mxu1 %v319_v20  ;;  %v495_v42 = vld [vmem:[%s1813_s7 + $0x68] sm:$0xff]  ;;  %v279_v43 = vld [vmem:[%s1834_s2 + $0x10] sm:$0xff]  ;;  %v494_v44 = vld [vmem:[%s1813_s7 + $0x60] sm:$0xff] }
  0x3c   :  { %895 = vmatprep.subr.mxu0 %v300_v21  ;;  %1021 = vmatprep.subr.mxu1 %v1159_v2  ;;  %v493_v45 = vld [vmem:[%s1813_s7 + $0x58] sm:$0xff]  ;;  %v492_v46 = vld [vmem:[%s1813_s7 + $0x50] sm:$0xff]  ;;  %v491_v47 = vld [vmem:[%s1813_s7 + $0x48] sm:$0xff] }
  0x3d   :  { %896 = vmatpush3.msra.mxu0 %v284_v22  ;;  %1022 = vmatpush3.msra.mxu1 %v318_v23  ;;  %v490_v48 = vld [vmem:[%s1813_s7 + $0x40] sm:$0xff]  ;;  %v489_v49 = vld [vmem:[%s1813_s7 + $0x38] sm:$0xff]  ;;  %v488_v50 = vld [vmem:[%s1813_s7 + $0x30] sm:$0xff] }
  0x3e   :  { %897 = vmatprep.subr.mxu0 %v299_v24  ;;  %1023 = vmatprep.subr.mxu1 %v1159_v2  ;;  %v487_v51 = vld [vmem:[%s1813_s7 + $0x28] sm:$0xff]  ;;  %v486_v52 = vld [vmem:[%s1813_s7 + $0x20] sm:$0xff]  ;;  %v485_v53 = vld [vmem:[%s1813_s7 + $0x18] sm:$0xff] }
  0x3f   :  { %898 = vmatpush3.msra.mxu0 %v283_v25  ;;  %1024 = vmatpush3.msra.mxu1 %v317_v26  ;;  %v484_v54 = vld [vmem:[%s1813_s7 + $0x10] sm:$0xff]  ;;  %v483_v55 = vld [vmem:[%s1813_s7 + $0x8] sm:$0xff]  ;;  %v482_v56 = vld [vmem:[%s1813_s7] sm:$0xff]  ;;  %s1163_s7 = smov 96  }
  0x40   :  { %899 = vmatprep.subr.mxu0 %v298_v27  ;;  %1025 = vmatprep.subr.mxu1 %v1159_v2  ;;  %v481_v57 = vld [vmem:[%s1835_s30] sm:$0xff]  ;;  %v597_v4 = vld [vmem:[%s1818_s12 + $0x78] sm:$0xff]  ;;  %v596_v5 = vld [vmem:[%s1818_s12 + $0x70] sm:$0xff] }
  0x41   :  { %900 = vmatpush3.msra.mxu0 %v282_v28  ;;  %1026 = vmatpush3.msra.mxu1 %v316_v29  ;;  %v811_v58 = vld [vmem:[%s1814_s8] ss:$0 sm:$0xff]  ;;  %v595_v6 = vld [vmem:[%s1818_s12 + $0x68] sm:$0xff]  ;;  %v593_v11 = vld [vmem:[%s1818_s12 + $0x58] sm:$0xff] }
  0x42   :  { %901 = vmatprep.subr.mxu0 %v297_v30  ;;  %1027 = vmatprep.subr.mxu1 %v1159_v2  ;;  %v812_v0 = vld [vmem:[%s1815_s9] ss:$0 sm:$0xff]  ;;  %v592_v13 = vld [vmem:[%s1818_s12 + $0x50] sm:$0xff]  ;;  %v591_v16 = vld [vmem:[%s1818_s12 + $0x48] sm:$0xff] }
  0x43   :  { %902 = vmatpush3.msra.mxu0 %v281_v31  ;;  %399 = vmatprep.mubr.f32.mxu0 %v278_v32  ;;  %v594_v8 = vld [vmem:[%s1818_s12 + $0x60] sm:$0xff]  ;;  %v589_v20 = vld [vmem:[%s1818_s12 + $0x38] sm:$0xff]  ;;  %v588_v21 = vld [vmem:[%s1818_s12 + $0x30] sm:$0xff] }
  0x44   :  { %903 = vmatprep.subr.mxu0 %v296_v33  ;;  %1028 = vmatpush3.msra.mxu1 %v315_v34  ;;  %v813_v10 = vld [vmem:[%s1816_s10] ss:$0 sm:$0xff]  ;;  %v587_v22 = vld [vmem:[%s1818_s12 + $0x28] sm:$0xff]  ;;  %v585_v24 = vld [vmem:[%s1818_s12 + $0x18] sm:$0xff] }
  0x45   :  { %904 = vmatpush3.msra.mxu0 %v280_v35  ;;  %1029 = vmatprep.subr.mxu1 %v1159_v2  ;;  %v590_v19 = vld [vmem:[%s1818_s12 + $0x40] sm:$0xff]  ;;  %v584_v25 = vld [vmem:[%s1818_s12 + $0x10] sm:$0xff]  ;;  %v583_v26 = vld [vmem:[%s1818_s12 + $0x8] sm:$0xff] }
  0x46   :  { %400 = vmatmul.mubr.f32.vlgmr.msra.gmra.mxu0 %v277_v36  ;;  %1038 = vmatprep.subr.mxu0 %v1159_v2  ;;  %v586_v23 = vld [vmem:[%s1818_s12 + $0x20] sm:$0xff]  ;;  %v683_v29 = vld [vmem:[%s1819_s13 + $0x38] sm:$0xff]  ;;  %v682_v30 = vld [vmem:[%s1819_s13 + $0x30] sm:$0xff] }
  0x47   :  { %1030 = vmatpush3.msra.mxu1 %v314_v37  ;;  %1039 = vmatpush3.msra.mxu0 %v497_v38  ;;  %v582_v27 = vld [vmem:[%s1818_s12] sm:$0xff]  ;;  %v681_v32 = vld [vmem:[%s1819_s13 + $0x28] sm:$0xff]  ;;  %v679_v36 = vld [vmem:[%s1819_s13 + $0x18] sm:$0xff] }
  0x48   :  { %1031 = vmatprep.subr.mxu1 %v1159_v2  ;;  %1040 = vmatprep.subr.mxu0 %v1159_v2  ;;  %v814_v28 = vld [vmem:[%s1817_s11] ss:$0 sm:$0xff] }
  0x49   :  { %1032 = vmatpush3.msra.mxu1 %v313_v39  ;;  %1041 = vmatpush3.msra.mxu0 %v496_v40  ;;  %v680_v35 = vld [vmem:[%s1819_s13 + $0x20] sm:$0xff] }
  0x4a   :  { %1033 = vmatprep.subr.mxu1 %v1159_v2  ;;  %1042 = vmatprep.subr.mxu0 %v1159_v2 }
  0x4b   :  { %1034 = vmatpush3.msra.mxu1 %v312_v41  ;;  %1035 = vmatprep.mubr.msk.f32.mxu1 %vm1160_vm0, %v1159_v2  ;;  %v678_v41 = vld [vmem:[%s1819_s13 + $0x10] sm:$0xff] }
  0x4c   :  { %1043 = vmatpush3.msra.mxu0 %v495_v42  ;;  %1036 = vmatmul.mubr.f32.vlgmr.msra.gmra.mxu1 %v279_v43  ;;  %v677_v42 = vld [vmem:[%s1819_s13 + $0x8] sm:$0xff]  ;;  %v676_v43 = vld [vmem:[%s1819_s13] sm:$0xff] }
  0x4d   :  { %1044 = vmatprep.subr.mxu0 %v1159_v2  ;;  %1070 = vmatprep.mubr.msk.f32.mxu0 %vm1160_vm0, %v1159_v2 }
  0x4e   :  { %1045 = vmatpush3.msra.mxu0 %v494_v44  ;;  %1073 = vmatprep.subr.mxu1 %v1159_v2  ;;  %v815_v44 = vld [vmem:[%s1820_s14] ss:$0 sm:$0xff]  ;;  %s1164_s14 = smov [#allocation3]  }
  0x4f   :  { %1046 = vmatprep.subr.mxu0 %v1159_v2  ;;  %1105 = vmatprep.mubr.msk.f32.mxu1 %vm1160_vm0, %v1159_v2  ;;  %s799_s2 = sshll.u32 %s1164_s14, 4  ;;  %s800_s2 = int_to_ptr.vmem [resolvable:$true] %s799_s2 }
  0x50   :  { %1047 = vmatpush3.msra.mxu0 %v493_v45  ;;  %1074 = vmatpush3.msra.mxu1 %v597_v4  ;;  %s1137_s28 = scalar_lea.vmem %s800_s2, 128  ;;  %p1142_p1 = scmp.lt.s32.totalorder %s800_s2, %s800_s2 }
  0x51   :  { %1048 = vmatprep.subr.mxu0 %v1159_v2  ;;  %1075 = vmatprep.subr.mxu1 %v1159_v2  ;;  %p1138_p0 = scmp.ne.s32.totalorder %s800_s2, %s1137_s28  ;;  %p1143_p2 = scmp.lt.s32.totalorder %s1137_s28, %s1137_s28 }
  0x52   :  { %1049 = vmatpush3.msra.mxu0 %v492_v46  ;;  %1076 = vmatpush3.msra.mxu1 %v596_v5 }
  0x53   :  { %1050 = vmatprep.subr.mxu0 %v1159_v2  ;;  %1077 = vmatprep.subr.mxu1 %v1159_v2  ;;  %p1144_p3 = por %p1143_p2, %p1142_p1 }
  0x54   :  { %1051 = vmatpush3.msra.mxu0 %v491_v47  ;;  %1078 = vmatpush3.msra.mxu1 %v595_v6 }
  0x55   :  { %1052 = vmatprep.subr.mxu0 %v1159_v2  ;;  %1079 = vmatprep.subr.mxu1 %v1159_v2  ;;  %p1145_p4 = pnand %p1144_p3, %p1138_p0 }
  0x56   :  { %1053 = vmatpush3.msra.mxu0 %v490_v48  ;;  %1080 = vmatpush3.msra.mxu1 %v594_v8 }
  0x57   :  { %1054 = vmatprep.subr.mxu0 %v1159_v2  ;;  %1081 = vmatprep.subr.mxu1 %v1159_v2 }
  0x58   :  { %1055 = vmatpush3.msra.mxu0 %v489_v49  ;;  %1082 = vmatpush3.msra.mxu1 %v593_v11  ;;  %v816_v49 = vld [vmem:[%s1821_s15] ss:$0 sm:$0xff] }
  0x59   :  { %1056 = vmatprep.subr.mxu0 %v1159_v2  ;;  %1083 = vmatprep.subr.mxu1 %v1159_v2 }
  0x5a   :  { %1057 = vmatpush3.msra.mxu0 %v488_v50  ;;  %1084 = vmatpush3.msra.mxu1 %v592_v13 }
  0x5b   :  { %1058 = vmatprep.subr.mxu0 %v1159_v2  ;;  %1085 = vmatprep.subr.mxu1 %v1159_v2 }
  0x5c   :  { %1059 = vmatpush3.msra.mxu0 %v487_v51  ;;  %1086 = vmatpush3.msra.mxu1 %v591_v16 }
  0x5d   :  { %1060 = vmatprep.subr.mxu0 %v1159_v2  ;;  %1087 = vmatprep.subr.mxu1 %v1159_v2 }
  0x5e   :  { %1061 = vmatpush3.msra.mxu0 %v486_v52  ;;  %1088 = vmatpush3.msra.mxu1 %v590_v19  ;;  %v818_v52 = vld [vmem:[%s1822_s16] ss:$0 sm:$0xff] }
  0x5f   :  { %1062 = vmatprep.subr.mxu0 %v1159_v2  ;;  %1089 = vmatprep.subr.mxu1 %v1159_v2 }
  0x60   :  { %1063 = vmatpush3.msra.mxu0 %v485_v53  ;;  %1090 = vmatpush3.msra.mxu1 %v589_v20 }
  0x61   :  { %1064 = vmatprep.subr.mxu0 %v1159_v2  ;;  %1091 = vmatprep.subr.mxu1 %v1159_v2 }
  0x62   :  { %1065 = vmatpush3.msra.mxu0 %v484_v54  ;;  %1092 = vmatpush3.msra.mxu1 %v588_v21 }
  0x63   :  { %1066 = vmatprep.subr.mxu0 %v1159_v2  ;;  %1093 = vmatprep.subr.mxu1 %v1159_v2 }
  0x64   :  { %1067 = vmatpush3.msra.mxu0 %v483_v55  ;;  %1094 = vmatpush3.msra.mxu1 %v587_v22 }
  0x65   :  { %1068 = vmatprep.subr.mxu0 %v1159_v2  ;;  %1095 = vmatprep.subr.mxu1 %v1159_v2 }
  0x66   :  { %1069 = vmatpush3.msra.mxu0 %v482_v56  ;;  %1096 = vmatpush3.msra.mxu1 %v586_v23 }
  0x67   :  { %1071 = vmatmul.mubr.f32.vlgmr.msra.gmra.mxu0 %v481_v57  ;;  %1108 = vmatprep.subr.mxu0 %v1159_v2 }
  0x68   :  { %1124 = vmatprep.mubr.msk.f32.mxu0 %vm1160_vm0, %v1159_v2  ;;  %1097 = vmatprep.subr.mxu1 %v1159_v2 }
  0x69   :  { %1098 = vmatpush3.msra.mxu1 %v585_v24  ;;  %1109 = vmatpush3.msra.mxu0 %v683_v29 }
  0x6a   :  { %1099 = vmatprep.subr.mxu1 %v1159_v2  ;;  %1110 = vmatprep.subr.mxu0 %v1159_v2 }
  0x6b   :  { %1100 = vmatpush3.msra.mxu1 %v584_v25  ;;  %1111 = vmatpush3.msra.mxu0 %v682_v30 }
  0x6c   :  { %1101 = vmatprep.subr.mxu1 %v1159_v2  ;;  %1112 = vmatprep.subr.mxu0 %v1159_v2 }
  0x6d   :  { %1102 = vmatpush3.msra.mxu1 %v583_v26  ;;  %1113 = vmatpush3.msra.mxu0 %v681_v32 }
  0x6e   :  { %1103 = vmatprep.subr.mxu1 %v1159_v2  ;;  %1114 = vmatprep.subr.mxu0 %v1159_v2 }
  0x6f   :  { %1104 = vmatpush3.msra.mxu1 %v582_v27  ;;  %1115 = vmatpush3.msra.mxu0 %v680_v35 }
  0x70   :  { %1116 = vmatprep.subr.mxu0 %v1159_v2 }
  0x71   :  { %1117 = vmatpush3.msra.mxu0 %v679_v36 }
  0x72   :  { %1118 = vmatprep.subr.mxu0 %v1159_v2 }
  0x73   :  { %1119 = vmatpush3.msra.mxu0 %v678_v41 }
  0x74   :  { %1120 = vmatprep.subr.mxu0 %v1159_v2 }
  0x75   :  { %1121 = vmatpush3.msra.mxu0 %v677_v42 }
  0x76   :  { %1122 = vmatprep.subr.mxu0 %v1159_v2 }
  0x77   :  { %1123 = vmatpush3.msra.mxu0 %v676_v43 }
  0xe6   :  { %v154_v59 = vpop.f32.mrf.mxu0 }
  0xe7   :  { %v155_v60 = vadd.f32 %v811_v58, %v154_v59 }
  0xe8   :  { %v1002_v61 = vpop.f32.mrf.mxu0 }
  0xe9   :  { %159 = vst.msk [vmem:[#allocation3] sm:$0xff] %vm158_vm1, %v155_v60 }
  0xea   :  { %v870_v62 = vpop.f32.mrf.mxu1 }
  0xec   :  { %v871_v63 = vpop.f32.mrf.mxu1 }
  0xed   :  { %v872_v1 = vadd.f32 %v871_v63, %v870_v62 }
  0xef   :  { %v268_v3 = vadd.f32 %v872_v1, %v812_v0 }
  0xf1   :  { %272 = vrot.lane.b32.xlu0 %v268_v3, %s1161_s22 }
 0x106   :  { %v905_v7 = vpop.f32.mrf.mxu0 }
 0x108   :  { %v906_v9 = vpop.f32.mrf.mxu0 }
 0x109   :  { %v907_v12 = vadd.f32 %v906_v9, %v905_v7 }
 0x10b   :  { %v402_v14 = vadd.f32 %v907_v12, %v813_v10 }
 0x10c   :  { %v471_v15 = vpop.f32.mrf.mxu1 }
 0x10d   :  { %v472_v17 = vadd.f32 %v471_v15, %v402_v14 }
 0x10e   :  { %v1037_v18 = vpop.f32.mrf.mxu1 }
 0x10f   :  { %476 = vrot.lane.b32.xlu0 %v472_v17, %s1162_s20 }
 0x127   :  { %v571_v31 = vpop.f32.mrf.mxu0 }
 0x128   :  { %v572_v33 = vadd.f32 %v814_v28, %v571_v31 }
 0x129   :  { %v1072_v34 = vpop.f32.mrf.mxu0 }
 0x12a   :  { %576 = vrot.lane.b32.xlu1 %v572_v33, %s1163_s7 }
 0x163   :  { %v273_v37 = vpop.permute.xlu0 %272 }
 0x164   :  { %276 = vst.msk [vmem:[#allocation3] sm:$0xff] %vm275_vm2, %v273_v37 }
 0x181   :  { %v477_v38 = vpop.permute.xlu0 %476 }
 0x182   :  { %480 = vst.msk [vmem:[#allocation3] sm:$0xff] %vm479_vm3, %v477_v38 }
 0x19c   :  { %v577_v39 = vpop.permute.xlu1 %576 }
 0x19d   :  { %580 = vst.msk [vmem:[#allocation3] sm:$0xff] %vm579_vm4, %v577_v39 }
 0x1a4   :  { %v581_v40 = vld [vmem:[#allocation3] sm:$0xff] }
 0x1a5   :  { %1106 = vmatmul.mubr.f32.vlgmr.msra.gmra.mxu1 %v581_v40 }
 0x265   :  { %v671_v45 = vpop.f32.mrf.mxu1 }
 0x266   :  { %v672_v46 = vadd.f32 %v815_v44, %v671_v45 }
 0x267   :  { %v1107_v47 = vpop.f32.mrf.mxu1 }
 0x268   :  { %v675_v48 = vmax.f32 %v672_v46, 0.0 }
 0x26a   :  { %1125 = vmatmul.mubr.msk.f32.vlgmr.msra.gmra.mxu0 %vm691_vm5, %v675_v48 }
 0x32a   :  { %v761_v2 = vpop.f32.mrf.mxu0 }
 0x32b   :  { %v762_v50 = vadd.f32 %v816_v49, %v761_v2 }
 0x32c   :  { %v1126_v51 = vpop.f32.mrf.mxu0 }
 0x32d   :  { %v765_v53 = vmax.f32 %v762_v50, 0.0 }
 0x32f   :  { %v773_v54 = vmul.f32 %v818_v52, %v765_v53 }
 0x331   :  { %v774_v55 = vsel %vm691_vm5, %v773_v54, 0.0 }
 0x332   :  { %775 = vadd.xlane.f32.xlu1 %v774_v55 }
 0x333   :  { %1148 = shalt.err (!%p1145_p4)
}
 0x334   :  { %802 = dma.vmem_to_hbm [thread:$0]  %s800_s2, 128, %s1824_s18, [#allocation4]   ;;  %v819_v56 = vld [vmem:[#allocation2] ss:$0 sm:$0xff]  ;;  %vm791_vm6 = vcmask 7168  }
 0x3bb   :  { %v776_v57 = vpop.xlane.xlu1 %775 }
 0x3bc   :  { %v784_v58 = vadd.f32 %v819_v56, %v776_v57 }
 0x3be   :  { %v820_v59 = vmul.f32 -1.442695, %v784_v58 }
 0x3c0   :  { %1133 = vpow2.f32 %v820_v59 }
 0x3cd   :  { %v1134_v60 = vpop.eup %1133 }
 0x3ce   :  { %v788_v61 = vadd.f32 1.0, %v1134_v60 }
 0x3d0   :  { %1135 = vrcp.f32 %v788_v61 }
 0x3dd   :  { %v1136_v62 = vpop.eup %1135 }
 0x3de   :  { %792 = vst.msk [vmem:[%s1825_s19] sm:$0xff] %vm791_vm6, %v1136_v62 }
 0x3df   :  { %1157 = dma.done.wait [#allocation4], 128  }
 0x3e0   :  { %1158 = vsyncadd [#allocation4], 4294967168 }
 0x3e1   :  { %810 = vsyncpa [#allocation4], 1 }

</bundles_post_ra>
